<compile_context>
chip_gen: v6e
topology: v6e:2x2x1
jax: 0.10.0
libtpu: 0.0.40
codegen_flags: <defaults>
</compile_context>

<pallas_src>
import functools

import jax
import jax.numpy as jnp
from jax.experimental import pallas as pl
from jax.experimental.pallas import tpu as pltpu


class EmptyBasisException(Exception):
    def __init__(self):
        super().__init__(
            "The KernelBasis you tried to instantiate is empty (dim = 0). "
            "You should catch this exception."
        )


def _round_up(x: int, m: int) -> int:
    return ((x + m - 1) // m) * m


# ----------------------------- Pallas kernel -------------------------------

def _gaussian_basis_kernel(points_ref, radii_ref, coef_ref, a_ref, out_ref, *, ndims):
    # points_ref: (TN, D)    VMEM
    # radii_ref : (1, BCC)   VMEM  radius_b replicated over its c_out*c_in lanes
    # coef_ref  : (1, BCC)   VMEM  -0.5 / sigma_b^2, replicated likewise
    # a_ref     : (1, BCC)   VMEM  A flattened to dim*c_out*c_in
    # out_ref   : (TN, BCC)  VMEM  lane-flattened output slab (final layout)
    pts = points_ref[...]
    # Unrolled squared norm over the tiny, static coordinate axis: pure VPU,
    # no XLU cross-lane reduce.
    r2 = pts[:, 0:1] * pts[:, 0:1]
    for k in range(1, ndims):
        c = pts[:, k:k + 1]
        r2 = r2 + c * c
    r = jnp.sqrt(r2)                                    # (TN, 1)
    d = r - radii_ref[...]                              # (TN, BCC)
    # exp is evaluated per output lane (parameters pre-replicated in the
    # wrapper); the EUP has ample slack in this HBM-write-bound kernel.
    # TODO(synk): for dim*c_out*c_in >> 128 this could instead exp over a
    # (TN, dim_pad) tile and expand via an MXU matmul with a block-structured
    # A matrix; irrelevant at the small shapes used here.
    out_ref[...] = jnp.exp(d * d * coef_ref[...]) * a_ref[...]


def _vmem_budget_bytes() -> int:
    # Generation-aware budget for the double-buffered (points, out) tiles:
    # ~1/4 of physical VMEM, capped at 32 MiB (v5e/v6e: 128 MiB -> 32 MiB,
    # v7x: 64 MiB -> 16 MiB), floored at 8 MiB.
    try:
        cap = int(pltpu.get_tpu_info().vmem_capacity_bytes)
    except Exception:
        cap = 64 << 20
    return max(8 << 20, min(cap // 4, 32 << 20)), cap


def _choose_tile(n: int, d: int, bcc: int, budget_bytes: int) -> int:
    # Biggest row tile that fits the VMEM budget (double-buffered in + out),
    # capped at 4096 rows; keep at least 2 grid steps (v7x megacore) when
    # there is enough work to split.
    bytes_per_row = 2 * 4 * (d + bcc)
    cap_rows = max(8, (budget_bytes // bytes_per_row) // 8 * 8)
    tn = min(_round_up(n, 8), 4096, cap_rows)
    if n >= 16:
        tn = min(tn, _round_up(pl.cdiv(n, 2), 8))
    return max(8, tn)


def _sample_pallas(points, radii_rep, coef_rep, a_flat, *, tn=None):
    n, d = points.shape
    bcc = a_flat.shape[1]
    budget, vmem_cap = _vmem_budget_bytes()
    if tn is None:
        tn = _choose_tile(n, d, bcc, budget)
    # Ragged last block is masked by Pallas: no jnp.pad / out[:n] copy needed.
    grid = (pl.cdiv(n, tn),)

    # Explicit scoped-VMEM limit: large enough for the chosen tiles on v5e's
    # small default, small enough to stay within v7x's 64 MiB physical VMEM.
    vmem_limit = int(min(vmem_cap - (8 << 20), budget + (8 << 20)))

    kernel = functools.partial(_gaussian_basis_kernel, ndims=d)
    return pl.pallas_call(
        kernel,
        out_shape=jax.ShapeDtypeStruct((n, bcc), jnp.float32),
        grid_spec=pltpu.PrefetchScalarGridSpec(
            num_scalar_prefetch=0,
            grid=grid,
            in_specs=[
                pl.BlockSpec((tn, d), lambda i: (i, 0)),
                pl.BlockSpec((1, bcc), lambda i: (0, 0)),
                pl.BlockSpec((1, bcc), lambda i: (0, 0)),
                pl.BlockSpec((1, bcc), lambda i: (0, 0)),
            ],
            out_specs=pl.BlockSpec((tn, bcc), lambda i: (i, 0)),
        ),
        compiler_params=pltpu.CompilerParams(
            dimension_semantics=("parallel",),
            vmem_limit_bytes=vmem_limit,
        ),
        cost_estimate=pl.CostEstimate(
            flops=int(n * (2 * d + 3 * bcc)),
            transcendentals=int(n * (bcc + 1)),
            bytes_accessed=int(4 * (n * d + n * bcc + 3 * bcc)),
        ),
    )(points, radii_rep, coef_rep, a_flat)


# ----------------------------- module wrapper -------------------------------

class GaussianKernelBasis:
    """Concrete KernelBasis: `dim` gaussian radial profiles times fixed
    (c_out, c_in) matrices.  forward(points) == sample(points)."""

    def __init__(self, dim: int, shape: tuple):
        assert isinstance(dim, int)
        assert isinstance(shape, tuple) and len(shape) == 2
        assert dim >= 0
        if dim == 0:
            raise EmptyBasisException()
        self.dim = dim
        self.shape = shape
        c_out, c_in = shape

        # deterministic parameter init (synthetic; no checkpoint load)
        self.radii = jnp.linspace(0.0, 2.0, dim, dtype=jnp.float32).reshape(1, dim)
        self.sigma = jnp.full((1, dim), 0.6, dtype=jnp.float32)
        key = jax.random.PRNGKey(42)
        self.A = jax.random.normal(key, (dim, c_out, c_in), dtype=jnp.float32)

        # --- precomputed kernel-friendly parameter layout -------------------
        # Flatten (dim, c_out, c_in) -> dim*c_out*c_in on the lane axis and
        # replicate the per-basis scalars over their c_out*c_in lanes.  The
        # divide is folded into coef = -0.5 / sigma^2.  No lane padding: the
        # kernel emits the final (N, dim*c_out*c_in) layout directly, so the
        # wrapper reshape is free.
        cc = c_out * c_in
        self._bcc = dim * cc
        coef = -0.5 / (self.sigma ** 2)                                  # (1, dim)
        self._radii_rep = jnp.repeat(self.radii[0], cc).reshape(1, self._bcc)
        self._coef_rep = jnp.repeat(coef[0], cc).reshape(1, self._bcc)
        self._a_flat = self.A.reshape(1, self._bcc)

    def sample(self, points, out=None):
        # points: (N, D)  ->  (N, dim, c_out, c_in) float32
        assert points.ndim == 2
        if points.dtype != jnp.float32:
            points = points.astype(jnp.float32)
        n = points.shape[0]
        flat = _sample_pallas(points, self._radii_rep, self._coef_rep, self._a_flat)
        # contiguous reshape: metadata only, no extra HBM pass
        res = flat.reshape(n, self.dim, self.shape[0], self.shape[1])
        # TODO(synk): the optional `out=` pre-allocated buffer has no clean
        # Pallas equivalent (would need input_output_aliases); we just return.
        return res

    def forward(self, points, out=None):
        return self.sample(points, out=out)

    __call__ = forward

    def __len__(self):
        return self.dim

    def __getitem__(self, idx: int) -> dict:
        assert 0 <= idx < self.dim
        return {
            "radius": float(self.radii[0, idx]),
            "sigma": float(self.sigma[0, idx]),
            "idx": idx,
        }

    def __iter__(self):
        for i in range(self.dim):
            yield self[i]


# ------------------------------- reference ----------------------------------

def _reference(points, radii, sigma, A):
    r = jnp.sqrt(jnp.sum(points * points, axis=-1, keepdims=True))   # (N, 1)
    g = jnp.exp(-0.5 * ((r - radii) / sigma) ** 2)                    # (N, dim)
    return g[:, :, None, None] * A[None, :, :, :]                     # (N, dim, co, ci)


if __name__ == "__main__":
    N, D = 256, 2          # N points in R^2 (planar base space)
    DIM = 8                # basis dimensionality
    C_OUT, C_IN = 4, 3     # kernel shape (c_out, c_in)

    key = jax.random.PRNGKey(0)
    points = jax.random.normal(key, (N, D), dtype=jnp.float32) * 1.5

    basis = GaussianKernelBasis(DIM, (C_OUT, C_IN))
    out = basis(points)
    out = jax.block_until_ready(out)

    ref = _reference(points, basis.radii, basis.sigma, basis.A)
    assert out.shape == (N, DIM, C_OUT, C_IN), out.shape
    assert jnp.allclose(out, ref, atol=1e-5, rtol=1e-5), float(
        jnp.max(jnp.abs(out - ref))
    )
    print("KERNEL_OK")
</pallas_src>

<mosaic_0001>
module attributes {stable_mosaic.version = 11 : i64} {
  func.func @_gaussian_basis_kernel(%arg0: i32, %arg1: memref<128x2xf32, #tpu.memory_space<vmem>>, %arg2: memref<1x96xf32, #tpu.memory_space<vmem>>, %arg3: memref<1x96xf32, #tpu.memory_space<vmem>>, %arg4: memref<1x96xf32, #tpu.memory_space<vmem>>, %arg5: memref<128x96xf32, #tpu.memory_space<vmem>>) attributes {dimension_semantics = [#tpu.dimension_semantics<parallel>], iteration_bounds = array<i64: 2>, scalar_prefetch = 0 : i64, scratch_operands = 0 : i64, tpu.core_type = #tpu.core_type<tc>, window_params = [{transform_indices = @transform_0, window_bounds = array<i64: 128, 2>}, {pipeline_mode = #tpu.pipeline_mode<synchronous>, transform_indices = @transform_1, window_bounds = array<i64: 1, 96>}, {pipeline_mode = #tpu.pipeline_mode<synchronous>, transform_indices = @transform_2, window_bounds = array<i64: 1, 96>}, {pipeline_mode = #tpu.pipeline_mode<synchronous>, transform_indices = @transform_3, window_bounds = array<i64: 1, 96>}, {transform_indices = @transform_4, window_bounds = array<i64: 128, 96>}]} {
    %c0 = arith.constant 0 : index
    %c0_0 = arith.constant 0 : index
    %0 = vector.load %arg1[%c0, %c0_0] : memref<128x2xf32, #tpu.memory_space<vmem>>, vector<128x2xf32>
    %1 = vector.extract_strided_slice %0 {offsets = [0, 0], sizes = [128, 1], strides = [1, 1]} : vector<128x2xf32> to vector<128x1xf32>
    %2 = vector.extract_strided_slice %0 {offsets = [0, 0], sizes = [128, 1], strides = [1, 1]} : vector<128x2xf32> to vector<128x1xf32>
    %3 = arith.mulf %1, %2 : vector<128x1xf32>
    %4 = vector.extract_strided_slice %0 {offsets = [0, 1], sizes = [128, 1], strides = [1, 1]} : vector<128x2xf32> to vector<128x1xf32>
    %5 = arith.mulf %4, %4 : vector<128x1xf32>
    %6 = arith.addf %3, %5 : vector<128x1xf32>
    %7 = math.sqrt %6 : vector<128x1xf32>
    %c0_1 = arith.constant 0 : index
    %c0_2 = arith.constant 0 : index
    %8 = vector.load %arg2[%c0_1, %c0_2] : memref<1x96xf32, #tpu.memory_space<vmem>>, vector<1x96xf32>
    %9 = vector.broadcast %7 : vector<128x1xf32> to vector<128x96xf32>
    %10 = vector.broadcast %8 : vector<1x96xf32> to vector<128x96xf32>
    %11 = arith.subf %9, %10 : vector<128x96xf32>
    %12 = arith.mulf %11, %11 : vector<128x96xf32>
    %c0_3 = arith.constant 0 : index
    %c0_4 = arith.constant 0 : index
    %13 = vector.load %arg3[%c0_3, %c0_4] : memref<1x96xf32, #tpu.memory_space<vmem>>, vector<1x96xf32>
    %14 = vector.broadcast %13 : vector<1x96xf32> to vector<128x96xf32>
    %15 = arith.mulf %12, %14 : vector<128x96xf32>
    %16 = math.exp %15 : vector<128x96xf32>
    %c0_5 = arith.constant 0 : index
    %c0_6 = arith.constant 0 : index
    %17 = vector.load %arg4[%c0_5, %c0_6] : memref<1x96xf32, #tpu.memory_space<vmem>>, vector<1x96xf32>
    %18 = vector.broadcast %17 : vector<1x96xf32> to vector<128x96xf32>
    %19 = arith.mulf %16, %18 : vector<128x96xf32>
    %c0_7 = arith.constant 0 : index
    %c0_8 = arith.constant 0 : index
    %20 = vector.load %arg5[%c0_7, %c0_8] : memref<128x96xf32, #tpu.memory_space<vmem>>, vector<128x96xf32>
    tpu.vector_store %arg5[%c0_7, %c0_8], %19 {strides = array<i32>} : memref<128x96xf32, #tpu.memory_space<vmem>>, vector<128x96xf32>,
    return
  }
  func.func @transform_0(%arg0: i32) -> (i32, i32) {
    %c0_i32 = arith.constant 0 : i32
    %c0_i32_0 = arith.constant 0 : i32
    return %arg0, %c0_i32 : i32, i32
  }
  func.func @transform_1(%arg0: i32) -> (i32, i32) {
    %c0_i32 = arith.constant 0 : i32
    %c0_i32_0 = arith.constant 0 : i32
    %c0_i32_1 = arith.constant 0 : i32
    return %c0_i32, %c0_i32_0 : i32, i32
  }
  func.func @transform_2(%arg0: i32) -> (i32, i32) {
    %c0_i32 = arith.constant 0 : i32
    %c0_i32_0 = arith.constant 0 : i32
    %c0_i32_1 = arith.constant 0 : i32
    return %c0_i32, %c0_i32_0 : i32, i32
  }
  func.func @transform_3(%arg0: i32) -> (i32, i32) {
    %c0_i32 = arith.constant 0 : i32
    %c0_i32_0 = arith.constant 0 : i32
    %c0_i32_1 = arith.constant 0 : i32
    return %c0_i32, %c0_i32_0 : i32, i32
  }
  func.func @transform_4(%arg0: i32) -> (i32, i32) {
    %c0_i32 = arith.constant 0 : i32
    %c0_i32_0 = arith.constant 0 : i32
    return %arg0, %c0_i32 : i32, i32
  }
}

</mosaic_0001>

<bundles_post_ra>
// kernel: tpu_custom_call.1
= control target key start
LH: loop header
LB: loop body
LE: loop exit
PB: predicated region body
PF: predicated region fallthrough
CT: control target
= control target key end

     0   :  { %s820_s15 = smov 0   ;;  %s1097_s0 = inlined_call_operand.vmem [shape: f32[256,2], index: 0, kind: input, shape index: {}]   ;;  %s1098_s1 = inlined_call_operand.vmem [shape: f32[1,96], index: 1, kind: input, shape index: {}]   ;;  %s1099_s2 = inlined_call_operand.vmem [shape: f32[1,96], index: 2, kind: input, shape index: {}]   ;;  %s1100_s3 = inlined_call_operand.vmem [shape: f32[1,96], index: 3, kind: input, shape index: {}]   ;;  %s1101_s4 = inlined_call_operand.vmem [shape: f32[256,96], index: 4, kind: output, shape index: {}]  }
   0x1 LB: > { %s695_s16 = sadd.s32 4294967295, %s791_s15   ;;  %p699_p0 = scmp.ge.s32.totalorder %s791_s15, 1  ;;  %s791_s15 = sphi %s820_s15, %s14_s15  }
   0x2   : > { %p163_p1 = scmp.lt.s32.totalorder %s791_s15, 3 }
   0x4   : > { %p164_p2 = pnand %p699_p0, %p163_p1 }
   0x5   : > { %s700_s17 = sshll.u32 (!%p164_p2), %s695_s16, 4  ;;  %s793_s22 = smov (!%p164_p2), 127  }
   0x6   : > { %167 = sbr.rel (%p164_p2) target bundleno = 334 (0x14e), region = 36  ;;  %p190_p3 = scmp.lt.s32.totalorder (!%p164_p2), %s700_s17, 31 }
   0xb   : > { %s1103_s17 = smov (!%p190_p3, %s700_s17), 31  ;;  %v794_v14 = vmov 0  }
   0xc   : > { %s701_s18 = sshll.u32 %s1103_s17, 3  ;;  %719 = vset.pattern.permute.xlu0 %v794_v14  ;;  %720 = vset.pattern.permute.xlu1 %v794_v14 }
   0xd   : > { %s836_s21 = scalar_lea.vmem %s1097_s0, %s701_s18  ;;  %s1031_s5 = scalar_lea.vmem %s1101_s4, %s701_s18 }
   0xe   : > { %v203_v0 = vld [vmem:[%s836_s21 + $0x10] sm:$0xff]  ;;  %v201_v1 = vld [vmem:[%s836_s21] sm:$0xff]  ;;  %v204_v2 = vld [vmem:[%s836_s21 + $0x18] sm:$0xff] }
   0xf   : > { %v219_v3 = vmul.f32 %v203_v0, %v203_v0  ;;  %v217_v4 = vmul.f32 %v201_v1, %v201_v1  ;;  %v202_v5 = vld [vmem:[%s836_s21 + $0x8] sm:$0xff]  ;;  %v220_v6 = vmul.f32 %v204_v2, %v204_v2  ;;  %v205_v9 = vld [vmem:[%s836_s21 + $0x20] sm:$0xff]  ;;  %v208_v12 = vld [vmem:[%s836_s21 + $0x38] sm:$0xff] }
  0x10   : > { %v218_v7 = vmul.f32 %v202_v5, %v202_v5  ;;  %v206_v8 = vld [vmem:[%s836_s21 + $0x28] sm:$0xff]  ;;  %v221_v11 = vmul.f32 %v205_v9, %v205_v9  ;;  %v207_v13 = vld [vmem:[%s836_s21 + $0x30] sm:$0xff]  ;;  %v224_v15 = vmul.f32 %v208_v12, %v208_v12  ;;  %v209_v18 = vld [vmem:[%s836_s21 + $0x40] sm:$0xff] }
  0x11   : > { %253 = vrot.lane.b32.xlu1 %v219_v3, %s793_s22  ;;  %249 = vrot.lane.b32.xlu0 %v217_v4, %s793_s22  ;;  %v222_v10 = vmul.f32 %v206_v8, %v206_v8  ;;  %v223_v16 = vmul.f32 %v207_v13, %v207_v13  ;;  %v210_v17 = vld [vmem:[%s836_s21 + $0x48] sm:$0xff]  ;;  %v225_v20 = vmul.f32 %v209_v18, %v209_v18  ;;  %v212_v21 = vld [vmem:[%s836_s21 + $0x58] sm:$0xff] }
  0x12   : > { %v226_v19 = vmul.f32 %v210_v17, %v210_v17  ;;  %v211_v22 = vld [vmem:[%s836_s21 + $0x50] sm:$0xff]  ;;  %v228_v23 = vmul.f32 %v212_v21, %v212_v21  ;;  %v214_v25 = vld [vmem:[%s836_s21 + $0x68] sm:$0xff]  ;;  %v213_v26 = vld [vmem:[%s836_s21 + $0x60] sm:$0xff] }
  0x13   : > { %v227_v24 = vmul.f32 %v211_v22, %v211_v22  ;;  %v864_v27 = vmul.f32 %v214_v25, %v214_v25  ;;  %v866_v28 = vmul.f32 %v213_v26, %v213_v26  ;;  %v216_v29 = vld [vmem:[%s836_s21 + $0x78] sm:$0xff]  ;;  %v215_v30 = vld [vmem:[%s836_s21 + $0x70] sm:$0xff] }
  0x14   : > { %v874_v31 = vmul.f32 %v216_v29, %v216_v29  ;;  %v876_v32 = vmul.f32 %v215_v30, %v215_v30 }
  0x15   : > { %255 = vrot.lane.b32.xlu1 %v220_v6, %s793_s22  ;;  %251 = vrot.lane.b32.xlu0 %v218_v7, %s793_s22 }
  0x19   : > { %259 = vrot.lane.b32.xlu1 %v222_v10, %s793_s22  ;;  %257 = vrot.lane.b32.xlu0 %v221_v11, %s793_s22 }
  0x1d   : > { %263 = vrot.lane.b32.xlu1 %v224_v15, %s793_s22  ;;  %261 = vrot.lane.b32.xlu0 %v223_v16, %s793_s22 }
  0x21   : > { %267 = vrot.lane.b32.xlu1 %v226_v19, %s793_s22  ;;  %265 = vrot.lane.b32.xlu0 %v225_v20, %s793_s22 }
  0x25   : > { %271 = vrot.lane.b32.xlu1 %v228_v23, %s793_s22  ;;  %269 = vrot.lane.b32.xlu0 %v227_v24, %s793_s22 }
  0x29   : > { %275 = vrot.lane.b32.xlu1 %v864_v27, %s793_s22  ;;  %273 = vrot.lane.b32.xlu0 %v866_v28, %s793_s22 }
  0x2d   : > { %279 = vrot.lane.b32.xlu1 %v874_v31, %s793_s22  ;;  %277 = vrot.lane.b32.xlu0 %v876_v32, %s793_s22 }
  0x83   : > { %v254_v33 = vpop.permute.xlu1 %253  ;;  %v250_v34 = vpop.permute.xlu0 %249 }
  0x84   : > { %v297_v35 = vadd.f32 %v250_v34, %v217_v4  ;;  %v882_v36 = vadd.f32 %v254_v33, %v219_v3 }
  0x86   : > { %721 = vrsqrt.f32 %v297_v35  ;;  %vm315_vm0 = vcmp.eq.f32.partialorder %v297_v35, inf  ;;  %vm317_vm1 = vcmp.eq.f32.partialorder %v297_v35, 0.0  ;;  %v318_v56 = vand.u32 2147483648, %v297_v35 }
  0x87   : > { %v256_v37 = vpop.permute.xlu1 %255  ;;  %v252_v38 = vpop.permute.xlu0 %251  ;;  %723 = vrsqrt.f32 %v882_v36  ;;  %vm329_vm3 = vcmp.eq.f32.partialorder %v882_v36, inf  ;;  %v332_v21 = vand.u32 2147483648, %v882_v36  ;;  %vm331_vm9 = vcmp.eq.f32.partialorder %v882_v36, 0.0 }
  0x88   : > { %v300_v39 = vadd.f32 %v256_v37, %v220_v6  ;;  %v298_v40 = vadd.f32 %v252_v38, %v218_v7 }
  0x8a   : > { %725 = vrsqrt.f32 %v300_v39  ;;  %vm336_vm2 = vcmp.eq.f32.partialorder %v300_v39, inf  ;;  %vm338_vm4 = vcmp.eq.f32.partialorder %v300_v39, 0.0  ;;  %v339_v2 = vand.u32 2147483648, %v300_v39 }
  0x8b   : > { %727 = vrsqrt.f32 %v298_v40  ;;  %v260_v41 = vpop.permute.xlu1 %259  ;;  %v258_v42 = vpop.permute.xlu0 %257  ;;  %vm322_vm5 = vcmp.eq.f32.partialorder %v298_v40, inf  ;;  %v325_v6 = vand.u32 2147483648, %v298_v40  ;;  %vm324_vm6 = vcmp.eq.f32.partialorder %v298_v40, 0.0 }
  0x8c   : > { %v885_v43 = vadd.f32 %v260_v41, %v222_v10  ;;  %v887_v44 = vadd.f32 %v258_v42, %v221_v11 }
  0x8e   : > { %729 = vrsqrt.f32 %v885_v43  ;;  %vm350_vm7 = vcmp.eq.f32.partialorder %v885_v43, inf  ;;  %v353_v17 = vand.u32 2147483648, %v885_v43  ;;  %vm352_vm8 = vcmp.eq.f32.partialorder %v885_v43, 0.0 }
  0x8f   : > { %731 = vrsqrt.f32 %v887_v44  ;;  %v264_v45 = vpop.permute.xlu1 %263  ;;  %v262_v46 = vpop.permute.xlu0 %261  ;;  %vm343_vm10 = vcmp.eq.f32.partialorder %v887_v44, inf  ;;  %vm345_vm13 = vcmp.eq.f32.partialorder %v887_v44, 0.0 }
  0x90   : > { %v891_v47 = vadd.f32 %v264_v45, %v224_v15  ;;  %v893_v48 = vadd.f32 %v262_v46, %v223_v16 }
  0x92   : > { %733 = vrsqrt.f32 %v891_v47  ;;  %vm364_vm11 = vcmp.eq.f32.partialorder %v891_v47, inf  ;;  %v367_v33 = vand.u32 2147483648, %v891_v47  ;;  %vm366_vm12 = vcmp.eq.f32.partialorder %v891_v47, 0.0 }
  0x93   : > { %735 = vrsqrt.f32 %v893_v48  ;;  %v268_v49 = vpop.permute.xlu1 %267  ;;  %v266_v50 = vpop.permute.xlu0 %265  ;;  %vm357_vm14 = vcmp.eq.f32.partialorder %v893_v48, inf }
  0x94   : > { %v722_v51 = vpop.eup %721  ;;  %v897_v52 = vadd.f32 %v268_v49, %v226_v19  ;;  %v899_v53 = vadd.f32 %v266_v50, %v225_v20 }
  0x95   : > { %v314_v54 = vmul.f32 %v722_v51, %v297_v35  ;;  %v724_v55 = vpop.eup %723 }
  0x96   : > { %737 = vrsqrt.f32 %v897_v52  ;;  %v328_v4 = vmul.f32 %v724_v55, %v882_v36  ;;  %vm378_vm15 = vcmp.eq.f32.partialorder %v897_v52, inf  ;;  %v381_v41 = vand.u32 2147483648, %v897_v52 }
  0x97   : > { %v726_v57 = vpop.eup %725  ;;  %739 = vrsqrt.f32 %v899_v53  ;;  %v272_v58 = vpop.permute.xlu1 %271  ;;  %v316_v60 = vsel %vm315_vm0, %v297_v35, %v314_v54  ;;  %vm380_vm0 = vcmp.eq.f32.partialorder %v897_v52, 0.0 }
  0x98   : > { %v270_v59 = vpop.permute.xlu0 %269  ;;  %v728_v61 = vpop.eup %727  ;;  %v904_v62 = vadd.f32 %v272_v58, %v228_v23  ;;  %v319_v0 = vsel %vm317_vm1, %v318_v56, %v316_v60  ;;  %v335_v1 = vmul.f32 %v726_v57, %v300_v39  ;;  %v330_v18 = vsel %vm329_vm3, %v882_v36, %v328_v4 }
  0x99   : > { %v906_v63 = vadd.f32 %v270_v59, %v227_v24  ;;  %428 = vperm.xlu0 %719, %v319_v0   ;;  %v321_v3 = vmul.f32 %v728_v61, %v298_v40  ;;  %v333_v29 = vsel %vm331_vm9, %v332_v21, %v330_v18  ;;  %vm359_vm1 = vcmp.eq.f32.partialorder %v893_v48, 0.0  ;;  %v995_v18 = vld [vmem:[%s1098_s1] ss:$0 sm:$0xff] }
  0x9a   : > { %741 = vrsqrt.f32 %v904_v62  ;;  %v337_v5 = vsel %vm336_vm2, %v300_v39, %v335_v1  ;;  %vm371_vm2 = vcmp.eq.f32.partialorder %v899_v53, inf  ;;  %vm392_vm3 = vcmp.eq.f32.partialorder %v904_v62, inf }
  0x9b   : > { %v730_v7 = vpop.eup %729  ;;  %743 = vrsqrt.f32 %v906_v63  ;;  %v276_v8 = vpop.permute.xlu1 %275  ;;  %v340_v10 = vsel %vm338_vm4, %v339_v2, %v337_v5  ;;  %v323_v11 = vsel %vm322_vm5, %v298_v40, %v321_v3  ;;  %v395_v54 = vand.u32 2147483648, %v904_v62 }
  0x9c   : > { %v274_v9 = vpop.permute.xlu0 %273  ;;  %v732_v12 = vpop.eup %731  ;;  %v912_v13 = vadd.f32 %v276_v8, %v864_v27  ;;  %v326_v15 = vsel %vm324_vm6, %v325_v6, %v323_v11  ;;  %v349_v16 = vmul.f32 %v730_v7, %v885_v43  ;;  %vm394_vm4 = vcmp.eq.f32.partialorder %v904_v62, 0.0 }
  0x9d   : > { %v915_v14 = vadd.f32 %v274_v9, %v866_v28  ;;  %443 = vperm.xlu0 %719, %v340_v10   ;;  %433 = vperm.xlu1 %720, %v326_v15   ;;  %v342_v19 = vmul.f32 %v732_v12, %v887_v44  ;;  %vm373_vm5 = vcmp.eq.f32.partialorder %v899_v53, 0.0  ;;  %vm385_vm6 = vcmp.eq.f32.partialorder %v906_v63, inf }
  0x9e   : > { %745 = vrsqrt.f32 %v912_v13  ;;  %v351_v20 = vsel %vm350_vm7, %v885_v43, %v349_v16  ;;  %vm406_vm7 = vcmp.eq.f32.partialorder %v912_v13, inf  ;;  %v409_v0 = vand.u32 2147483648, %v912_v13 }
  0x9f   : > { %v734_v22 = vpop.eup %733  ;;  %747 = vrsqrt.f32 %v915_v14  ;;  %v280_v23 = vpop.permute.xlu1 %279  ;;  %v354_v25 = vsel %vm352_vm8, %v353_v17, %v351_v20  ;;  %v344_v34 = vsel %vm343_vm10, %v887_v44, %v342_v19  ;;  %vm408_vm8 = vcmp.eq.f32.partialorder %v912_v13, 0.0  ;;  %v1001_v20 = vld [vmem:[%s1099_s2] ss:$0 sm:$0xff] }
  0xa0   : > { %v278_v24 = vpop.permute.xlu0 %277  ;;  %v736_v26 = vpop.eup %735  ;;  %v932_v27 = vadd.f32 %v280_v23, %v874_v31  ;;  %v363_v30 = vmul.f32 %v734_v22, %v891_v47  ;;  %vm387_vm9 = vcmp.eq.f32.partialorder %v906_v63, 0.0  ;;  %vm399_vm10 = vcmp.eq.f32.partialorder %v915_v14, inf }
  0xa1   : > { %v935_v28 = vadd.f32 %v278_v24, %v876_v32  ;;  %453 = vperm.xlu0 %719, %v354_v25   ;;  %438 = vperm.xlu1 %720, %v333_v29   ;;  %v356_v35 = vmul.f32 %v736_v26, %v893_v48  ;;  %v346_v32 = vand.u32 2147483648, %v887_v44  ;;  %v360_v44 = vand.u32 2147483648, %v893_v48 }
  0xa2   : > { %749 = vrsqrt.f32 %v932_v27  ;;  %v365_v31 = vsel %vm364_vm11, %v891_v47, %v363_v30  ;;  %vm420_vm11 = vcmp.eq.f32.partialorder %v932_v27, inf  ;;  %v423_v8 = vand.u32 2147483648, %v932_v27 }
  0xa3   : > { %v738_v36 = vpop.eup %737  ;;  %751 = vrsqrt.f32 %v935_v28  ;;  %v368_v37 = vsel %vm366_vm12, %v367_v33, %v365_v31  ;;  %v347_v39 = vsel %vm345_vm13, %v346_v32, %v344_v34  ;;  %v358_v42 = vsel %vm357_vm14, %v893_v48, %v356_v35 }
  0xa4   : > { %v740_v38 = vpop.eup %739  ;;  %v377_v40 = vmul.f32 %v738_v36, %v897_v52  ;;  %v361_v50 = vsel %vm359_vm1, %v360_v44, %v358_v42  ;;  %v374_v48 = vand.u32 2147483648, %v899_v53  ;;  %vm422_vm12 = vcmp.eq.f32.partialorder %v932_v27, 0.0 }
  0xa5   : > { %463 = vperm.xlu0 %719, %v368_v37   ;;  %448 = vperm.xlu1 %720, %v347_v39   ;;  %v370_v43 = vmul.f32 %v740_v38, %v899_v53  ;;  %vm401_vm13 = vcmp.eq.f32.partialorder %v915_v14, 0.0  ;;  %vm413_vm14 = vcmp.eq.f32.partialorder %v935_v28, inf  ;;  %v416_v16 = vand.u32 2147483648, %v935_v28 }
  0xa6   : > { %v379_v45 = vsel %vm378_vm15, %v897_v52, %v377_v40  ;;  %vm415_vm15 = vcmp.eq.f32.partialorder %v935_v28, 0.0 }
  0xa7   : > { %v742_v46 = vpop.eup %741  ;;  %v382_v47 = vsel %vm380_vm0, %v381_v41, %v379_v45  ;;  %v372_v52 = vsel %vm371_vm2, %v899_v53, %v370_v43  ;;  %v388_v53 = vand.u32 2147483648, %v906_v63  ;;  %vm622_vm0 = vcmask 785408  }
  0xa8   : > { %v744_v49 = vpop.eup %743  ;;  %v391_v51 = vmul.f32 %v742_v46, %v904_v62  ;;  %v375_v60 = vsel %vm373_vm5, %v374_v48, %v372_v52 }
  0xa9   : > { %473 = vperm.xlu0 %719, %v382_v47   ;;  %458 = vperm.xlu1 %720, %v361_v50   ;;  %v384_v55 = vmul.f32 %v744_v49, %v906_v63 }
  0xaa   : > { %v393_v56 = vsel %vm392_vm3, %v904_v62, %v391_v51 }
  0xab   : > { %v746_v57 = vpop.eup %745  ;;  %v396_v58 = vsel %vm394_vm4, %v395_v54, %v393_v56  ;;  %v386_v62 = vsel %vm385_vm6, %v906_v63, %v384_v55  ;;  %v402_v63 = vand.u32 2147483648, %v915_v14 }
  0xac   : > { %v748_v59 = vpop.eup %747  ;;  %v405_v61 = vmul.f32 %v746_v57, %v912_v13  ;;  %v389_v6 = vsel %vm387_vm9, %v388_v53, %v386_v62 }
  0xad   : > { %483 = vperm.xlu0 %719, %v396_v58   ;;  %468 = vperm.xlu1 %720, %v375_v60   ;;  %v398_v1 = vmul.f32 %v748_v59, %v915_v14  ;;  %v1021_v60 = vld [vmem:[%s1100_s3] ss:$0 sm:$0xff] }
  0xae   : > { %v407_v2 = vsel %vm406_vm7, %v912_v13, %v405_v61 }
  0xaf   : > { %v750_v3 = vpop.eup %749  ;;  %v410_v4 = vsel %vm408_vm8, %v409_v0, %v407_v2  ;;  %v400_v9 = vsel %vm399_vm10, %v915_v14, %v398_v1 }
  0xb0   : > { %v752_v5 = vpop.eup %751  ;;  %v419_v7 = vmul.f32 %v750_v3, %v932_v27  ;;  %v403_v13 = vsel %vm401_vm13, %v402_v63, %v400_v9 }
  0xb1   : > { %493 = vperm.xlu0 %719, %v410_v4   ;;  %478 = vperm.xlu1 %720, %v389_v6   ;;  %v412_v10 = vmul.f32 %v752_v5, %v935_v28 }
  0xb2   : > { %v421_v11 = vsel %vm420_vm11, %v932_v27, %v419_v7 }
  0xb3   : > { %v424_v12 = vsel %vm422_vm12, %v423_v8, %v421_v11  ;;  %v414_v15 = vsel %vm413_vm14, %v935_v28, %v412_v10 }
  0xb4   : > { %v417_v17 = vsel %vm415_vm15, %v416_v16, %v414_v15 }
  0xb5   : > { %503 = vperm.xlu0 %719, %v424_v12   ;;  %488 = vperm.xlu1 %720, %v403_v13  }
  0xb9   : > { %498 = vperm.xlu1 %720, %v417_v17  }
 0x114   : > { %v429_v19 = vpop.permute.xlu0 %428 }
 0x115   : > { %v512_v14 = vsub.f32 %v429_v19, %v995_v18 }
 0x117   : > { %v528_v21 = vmul.f32 %v512_v14, %v512_v14 }
 0x118   : > { %v434_v22 = vpop.permute.xlu1 %433  ;;  %v444_v23 = vpop.permute.xlu0 %443 }
 0x119   : > { %v551_v24 = vmul.f32 %v1001_v20, %v528_v21  ;;  %v513_v25 = vsub.f32 %v434_v22, %v995_v18  ;;  %v515_v26 = vsub.f32 %v444_v23, %v995_v18 }
 0x11b   : > { %v567_v27 = vmul.f32 1.442695, %v551_v24  ;;  %v529_v28 = vmul.f32 %v513_v25, %v513_v25  ;;  %v531_v29 = vmul.f32 %v515_v26, %v515_v26 }
 0x11c   : > { %v439_v30 = vpop.permute.xlu1 %438  ;;  %v454_v33 = vpop.permute.xlu0 %453 }
 0x11d   : > { %753 = vpow2.f32 %v567_v27  ;;  %v552_v34 = vmul.f32 %v1001_v20, %v529_v28  ;;  %v554_v35 = vmul.f32 %v1001_v20, %v531_v29  ;;  %v514_v31 = vsub.f32 %v439_v30, %v995_v18 }
 0x11e   : > { %v517_v32 = vsub.f32 %v454_v33, %v995_v18 }
 0x11f   : > { %v569_v36 = vmul.f32 1.442695, %v552_v34  ;;  %v573_v37 = vmul.f32 1.442695, %v554_v35  ;;  %v530_v38 = vmul.f32 %v514_v31, %v514_v31 }
 0x120   : > { %v533_v39 = vmul.f32 %v517_v32, %v517_v32  ;;  %v449_v40 = vpop.permute.xlu1 %448  ;;  %v464_v41 = vpop.permute.xlu0 %463 }
 0x121   : > { %755 = vpow2.f32 %v569_v36  ;;  %v553_v42 = vmul.f32 %v1001_v20, %v530_v38  ;;  %v516_v43 = vsub.f32 %v449_v40, %v995_v18  ;;  %v519_v45 = vsub.f32 %v464_v41, %v995_v18 }
 0x122   : > { %757 = vpow2.f32 %v573_v37  ;;  %v556_v44 = vmul.f32 %v1001_v20, %v533_v39 }
 0x123   : > { %v571_v46 = vmul.f32 1.442695, %v553_v42  ;;  %v532_v47 = vmul.f32 %v516_v43, %v516_v43  ;;  %v535_v49 = vmul.f32 %v519_v45, %v519_v45 }
 0x124   : > { %v577_v50 = vmul.f32 1.442695, %v556_v44  ;;  %v459_v51 = vpop.permute.xlu1 %458  ;;  %v474_v54 = vpop.permute.xlu0 %473 }
 0x125   : > { %759 = vpow2.f32 %v571_v46  ;;  %v555_v52 = vmul.f32 %v1001_v20, %v532_v47  ;;  %v558_v55 = vmul.f32 %v1001_v20, %v535_v49  ;;  %v518_v56 = vsub.f32 %v459_v51, %v995_v18 }
 0x126   : > { %761 = vpow2.f32 %v577_v50  ;;  %v521_v48 = vsub.f32 %v474_v54, %v995_v18 }
 0x127   : > { %v575_v57 = vmul.f32 1.442695, %v555_v52  ;;  %v581_v58 = vmul.f32 1.442695, %v558_v55  ;;  %v534_v59 = vmul.f32 %v518_v56, %v518_v56 }
 0x128   : > { %v537_v61 = vmul.f32 %v521_v48, %v521_v48  ;;  %v469_v0 = vpop.permute.xlu1 %468  ;;  %v484_v62 = vpop.permute.xlu0 %483 }
 0x129   : > { %763 = vpow2.f32 %v575_v57  ;;  %v557_v1 = vmul.f32 %v1001_v20, %v534_v59  ;;  %v520_v2 = vsub.f32 %v469_v0, %v995_v18  ;;  %v523_v53 = vsub.f32 %v484_v62, %v995_v18 }
 0x12a   : > { %v754_v3 = vpop.eup %753  ;;  %765 = vpow2.f32 %v581_v58  ;;  %v560_v4 = vmul.f32 %v1001_v20, %v537_v61 }
 0x12b   : > { %v606_v5 = vmul.f32 %v754_v3, %v1021_v60  ;;  %v579_v6 = vmul.f32 1.442695, %v557_v1  ;;  %v536_v7 = vmul.f32 %v520_v2, %v520_v2  ;;  %v539_v8 = vmul.f32 %v523_v53, %v523_v53 }
 0x12c   : > { %v585_v9 = vmul.f32 1.442695, %v560_v4  ;;  %v479_v10 = vpop.permute.xlu1 %478  ;;  %v494_v11 = vpop.permute.xlu0 %493 }
 0x12d   : > { %623 = vst.msk [vmem:[%s1031_s5] sm:$0xff] %vm622_vm0, %v606_v5  ;;  %767 = vpow2.f32 %v579_v6  ;;  %v559_v63 = vmul.f32 %v1001_v20, %v536_v7  ;;  %v562_v12 = vmul.f32 %v1001_v20, %v539_v8  ;;  %v522_v13 = vsub.f32 %v479_v10, %v995_v18 }
 0x12e   : > { %v756_v15 = vpop.eup %755  ;;  %769 = vpow2.f32 %v585_v9  ;;  %v525_v16 = vsub.f32 %v494_v11, %v995_v18 }
 0x12f   : > { %v758_v17 = vpop.eup %757  ;;  %v607_v19 = vmul.f32 %v756_v15, %v1021_v60  ;;  %v583_v14 = vmul.f32 1.442695, %v559_v63  ;;  %v589_v21 = vmul.f32 1.442695, %v562_v12  ;;  %v538_v22 = vmul.f32 %v522_v13, %v522_v13 }
 0x130   : > { %v609_v23 = vmul.f32 %v758_v17, %v1021_v60  ;;  %v541_v24 = vmul.f32 %v525_v16, %v525_v16  ;;  %v489_v25 = vpop.permute.xlu1 %488  ;;  %v504_v26 = vpop.permute.xlu0 %503 }
 0x131   : > { %624 = vst.msk [vmem:[%s1031_s5 + $0x8] sm:$0xff] %vm622_vm0, %v607_v19  ;;  %771 = vpow2.f32 %v583_v14  ;;  %v561_v27 = vmul.f32 %v1001_v20, %v538_v22  ;;  %v524_v28 = vsub.f32 %v489_v25, %v995_v18  ;;  %v527_v29 = vsub.f32 %v504_v26, %v995_v18 }
 0x132   : > { %v760_v30 = vpop.eup %759  ;;  %626 = vst.msk [vmem:[%s1031_s5 + $0x18] sm:$0xff] %vm622_vm0, %v609_v23  ;;  %773 = vpow2.f32 %v589_v21  ;;  %v564_v33 = vmul.f32 %v1001_v20, %v541_v24 }
 0x133   : > { %v762_v34 = vpop.eup %761  ;;  %v608_v35 = vmul.f32 %v760_v30, %v1021_v60  ;;  %v587_v31 = vmul.f32 1.442695, %v561_v27  ;;  %v540_v32 = vmul.f32 %v524_v28, %v524_v28  ;;  %v543_v36 = vmul.f32 %v527_v29, %v527_v29 }
 0x134   : > { %v611_v37 = vmul.f32 %v762_v34, %v1021_v60  ;;  %v593_v38 = vmul.f32 1.442695, %v564_v33  ;;  %v499_v39 = vpop.permute.xlu1 %498 }
 0x135   : > { %625 = vst.msk [vmem:[%s1031_s5 + $0x10] sm:$0xff] %vm622_vm0, %v608_v35  ;;  %775 = vpow2.f32 %v587_v31  ;;  %v563_v40 = vmul.f32 %v1001_v20, %v540_v32  ;;  %v566_v41 = vmul.f32 %v1001_v20, %v543_v36  ;;  %v526_v42 = vsub.f32 %v499_v39, %v995_v18 }
 0x136   : > { %v764_v43 = vpop.eup %763  ;;  %628 = vst.msk [vmem:[%s1031_s5 + $0x28] sm:$0xff] %vm622_vm0, %v611_v37  ;;  %777 = vpow2.f32 %v593_v38 }
 0x137   : > { %v766_v45 = vpop.eup %765  ;;  %v610_v44 = vmul.f32 %v764_v43, %v1021_v60  ;;  %v591_v46 = vmul.f32 1.442695, %v563_v40  ;;  %v597_v47 = vmul.f32 1.442695, %v566_v41  ;;  %v542_v49 = vmul.f32 %v526_v42, %v526_v42 }
 0x138   : > { %v613_v50 = vmul.f32 %v766_v45, %v1021_v60 }
 0x139   : > { %627 = vst.msk [vmem:[%s1031_s5 + $0x20] sm:$0xff] %vm622_vm0, %v610_v44  ;;  %779 = vpow2.f32 %v591_v46  ;;  %v565_v18 = vmul.f32 %v1001_v20, %v542_v49 }
 0x13a   : > { %v768_v51 = vpop.eup %767  ;;  %630 = vst.msk [vmem:[%s1031_s5 + $0x38] sm:$0xff] %vm622_vm0, %v613_v50  ;;  %781 = vpow2.f32 %v597_v47 }
 0x13b   : > { %v770_v54 = vpop.eup %769  ;;  %v612_v52 = vmul.f32 %v768_v51, %v1021_v60  ;;  %v595_v55 = vmul.f32 1.442695, %v565_v18 }
 0x13c   : > { %v615_v56 = vmul.f32 %v770_v54, %v1021_v60 }
 0x13d   : > { %629 = vst.msk [vmem:[%s1031_s5 + $0x30] sm:$0xff] %vm622_vm0, %v612_v52  ;;  %783 = vpow2.f32 %v595_v55 }
 0x13e   : > { %v772_v48 = vpop.eup %771  ;;  %632 = vst.msk [vmem:[%s1031_s5 + $0x48] sm:$0xff] %vm622_vm0, %v615_v56 }
 0x13f   : > { %v774_v20 = vpop.eup %773  ;;  %v614_v57 = vmul.f32 %v772_v48, %v1021_v60 }
 0x140   : > { %v617_v58 = vmul.f32 %v774_v20, %v1021_v60 }
 0x141   : > { %631 = vst.msk [vmem:[%s1031_s5 + $0x40] sm:$0xff] %vm622_vm0, %v614_v57 }
 0x142   : > { %v776_v59 = vpop.eup %775  ;;  %634 = vst.msk [vmem:[%s1031_s5 + $0x58] sm:$0xff] %vm622_vm0, %v617_v58 }
 0x143   : > { %v778_v61 = vpop.eup %777  ;;  %v616_v0 = vmul.f32 %v776_v59, %v1021_v60 }
 0x144   : > { %v619_v62 = vmul.f32 %v778_v61, %v1021_v60 }
 0x145   : > { %633 = vst.msk [vmem:[%s1031_s5 + $0x50] sm:$0xff] %vm622_vm0, %v616_v0 }
 0x146   : > { %v780_v1 = vpop.eup %779  ;;  %636 = vst.msk [vmem:[%s1031_s5 + $0x68] sm:$0xff] %vm622_vm0, %v619_v62 }
 0x147   : > { %v782_v2 = vpop.eup %781  ;;  %v618_v53 = vmul.f32 %v780_v1, %v1021_v60 }
 0x148   : > { %v621_v3 = vmul.f32 %v782_v2, %v1021_v60 }
 0x149   : > { %635 = vst.msk [vmem:[%s1031_s5 + $0x60] sm:$0xff] %vm622_vm0, %v618_v53 }
 0x14a   : > { %v784_v4 = vpop.eup %783  ;;  %638 = vst.msk [vmem:[%s1031_s5 + $0x78] sm:$0xff] %vm622_vm0, %v621_v3 }
 0x14b   : > { %v620_v5 = vmul.f32 %v784_v4, %v1021_v60 }
 0x14d   : > { %637 = vst.msk [vmem:[%s1031_s5 + $0x70] sm:$0xff] %vm622_vm0, %v620_v5 }
 0x14e PF: > { %s14_s15 = sadd.s32 1, %s791_s15  }
 0x14f   : > { %p11_p4 = scmp.ge.s32.totalorder %s14_s15, 4  }
 0x151   :  { %13 = sbr.rel (!%p11_p4) target bundleno = 1 (0x1), region = 66 }

</bundles_post_ra>
